<compile_context>
chip_gen: v5e
topology: v5e:2x2
jax: 0.10.0
libtpu: 0.0.40
codegen_flags: <defaults>
</compile_context>

<pallas_src>
import math
import functools

import jax
import jax.numpy as jnp
from jax.experimental import pallas as pl
from jax.experimental.pallas import tpu as pltpu


def rztx_kernel(x_ref, wqkv_ref, bqkv_ref, wo_ref, bo_ref,
                w1_ref, b1_ref, w2_ref, b2_ref, resw_ref, o_ref,
                *, n_batch, seq_len, nhead):
    x = x_ref[...]                                   # (N*L, E)
    NL, E = x.shape
    Dh = E // nhead
    scale = 1.0 / math.sqrt(Dh)
    resw = resw_ref[0]                               # scalar from SMEM

    # ---- Packed QKV in-projection over all N*L rows (one wide matmul) ----
    qkv = jnp.dot(x, wqkv_ref[...],
                  preferred_element_type=jnp.float32) + bqkv_ref[...]   # (NL, 3E)
    q = (qkv[:, :E] * scale).reshape(n_batch, seq_len, E)
    k = qkv[:, E:2 * E].reshape(n_batch, seq_len, E)
    v = qkv[:, 2 * E:].reshape(n_batch, seq_len, E)

    # ---- Attention: per-head (L,L) scores/softmax/PV, batched over batch ----
    head_outs = []
    for h in range(nhead):
        lo, hi = h * Dh, (h + 1) * Dh
        qh = q[:, :, lo:hi]                          # (N, L, Dh)
        kh = k[:, :, lo:hi]
        vh = v[:, :, lo:hi]
        s = jnp.einsum('bqd,bkd->bqk', qh, kh,
                       preferred_element_type=jnp.float32)               # (N, L, L)
        s = s - jnp.max(s, axis=-1, keepdims=True)
        p = jnp.exp(s)
        p = p * pl.reciprocal(jnp.sum(p, axis=-1, keepdims=True), approx=True)
        head_outs.append(
            jnp.einsum('bqk,bkd->bqd', p, vh,
                       preferred_element_type=jnp.float32))               # (N, L, Dh)

    ctx = jnp.concatenate(head_outs, axis=-1).reshape(NL, E)              # (NL, E)

    # ---- Out-projection (single wide matmul) + ReZero residual #1 ----
    attn = jnp.dot(ctx, wo_ref[...],
                   preferred_element_type=jnp.float32) + bo_ref[...]
    src = x + resw * attn

    # ---- Feed-forward: linear1 -> relu -> linear2, ReZero residual #2 ----
    hdd = jnp.dot(src, w1_ref[...],
                  preferred_element_type=jnp.float32) + b1_ref[...]
    hdd = jnp.maximum(hdd, 0.0)
    ffn = jnp.dot(hdd, w2_ref[...],
                  preferred_element_type=jnp.float32) + b2_ref[...]

    o_ref[...] = src + resw * ffn


def rztx_encoder_layer(src_lne, params, *, nhead):
    """src_lne: (L, N, E) like PyTorch. Returns (L, N, E)."""
    wqkv, bqkv, wo, bo, w1, b1, w2, b2, resw = params
    L, N, E = src_lne.shape
    NL = N * L

    # Flatten batch into the matmul row dimension.
    x2d = jnp.transpose(src_lne, (1, 0, 2)).reshape(NL, E)

    # One-time layout plumbing: weights in `x @ W` orientation.
    wqkv_t = wqkv.T        # (E, 3E)
    wo_t = wo.T            # (E, E)
    w1_t = w1.T            # (E, F)
    w2_t = w2.T            # (F, E)
    resw1 = resw.reshape((1,))

    kernel = functools.partial(rztx_kernel, n_batch=N, seq_len=L, nhead=nhead)

    in_specs = [pl.BlockSpec(memory_space=pltpu.MemorySpace.VMEM)
                for _ in range(9)]                                   # x + 8 weight/bias arrays
    in_specs.append(pl.BlockSpec(memory_space=pltpu.MemorySpace.SMEM))  # resweight scalar

    out2d = pl.pallas_call(
        kernel,
        out_shape=jax.ShapeDtypeStruct((NL, E), jnp.float32),
        in_specs=in_specs,
        out_specs=pl.BlockSpec(memory_space=pltpu.MemorySpace.VMEM),
    )(x2d, wqkv_t, bqkv, wo_t, bo, w1_t, b1, w2_t, b2, resw1)

    return jnp.transpose(out2d.reshape(N, L, E), (1, 0, 2))          # back to (L, N, E)


def rztx_reference(src_lne, params, *, nhead):
    """Pure-JAX reference matching PyTorch semantics (eval mode)."""
    wqkv, bqkv, wo, bo, w1, b1, w2, b2, resw = params
    L, N, E = src_lne.shape
    Dh = E // nhead
    x = jnp.transpose(src_lne, (1, 0, 2))                      # (N, L, E)

    qkv = jnp.einsum("nle,fe->nlf", x, wqkv) + bqkv[0]          # (N, L, 3E)
    q, k, v = qkv[..., :E], qkv[..., E:2 * E], qkv[..., 2 * E:]

    def split_heads(t):                                          # (N, H, L, Dh)
        return jnp.transpose(t.reshape(N, L, nhead, Dh), (0, 2, 1, 3))

    q, k, v = split_heads(q), split_heads(k), split_heads(v)
    s = jnp.einsum("nhqd,nhkd->nhqk", q / math.sqrt(Dh), k)
    p = jax.nn.softmax(s, axis=-1)
    o = jnp.einsum("nhqk,nhkd->nhqd", p, v)
    o = jnp.transpose(o, (0, 2, 1, 3)).reshape(N, L, E)
    attn = jnp.einsum("nle,fe->nlf", o, wo) + bo[0]

    src = x + resw[0, 0] * attn
    hdd = jax.nn.relu(jnp.einsum("nle,fe->nlf", src, w1) + b1[0])
    ffn = jnp.einsum("nlf,ef->nle", hdd, w2) + b2[0]
    out = src + resw[0, 0] * ffn
    return jnp.transpose(out, (1, 0, 2))                        # (L, N, E)


if __name__ == "__main__":
    # Small shapes consistent with the module: (seq, batch, d_model)
    L, N, E = 8, 2, 32
    NHEAD = 4
    FF = 64

    key = jax.random.PRNGKey(0)
    keys = jax.random.split(key, 9)

    src = jax.random.normal(keys[0], (L, N, E), dtype=jnp.float32)

    # Deterministic parameter init (shapes per nn.MultiheadAttention / nn.Linear)
    wqkv = 0.05 * jax.random.normal(keys[1], (3 * E, E), jnp.float32)   # in_proj_weight
    bqkv = 0.05 * jax.random.normal(keys[2], (1, 3 * E), jnp.float32)   # in_proj_bias
    wo   = 0.05 * jax.random.normal(keys[3], (E, E), jnp.float32)       # out_proj.weight
    bo   = 0.05 * jax.random.normal(keys[4], (1, E), jnp.float32)       # out_proj.bias
    w1   = 0.05 * jax.random.normal(keys[5], (FF, E), jnp.float32)      # linear1.weight
    b1   = 0.05 * jax.random.normal(keys[6], (1, FF), jnp.float32)      # linear1.bias
    w2   = 0.05 * jax.random.normal(keys[7], (E, FF), jnp.float32)      # linear2.weight
    b2   = 0.05 * jax.random.normal(keys[8], (1, E), jnp.float32)       # linear2.bias
    # resweight: module initializes to 0 (output == input); use a nonzero
    # deterministic value so the kernel's compute path is actually exercised.
    resw = jnp.full((1, 1), 0.1, jnp.float32)

    params = (wqkv, bqkv, wo, bo, w1, b1, w2, b2, resw)

    out = rztx_encoder_layer(src, params, nhead=NHEAD)
    out = jax.block_until_ready(out)

    ref = rztx_reference(src, params, nhead=NHEAD)
    assert out.shape == (L, N, E)
    # Tolerance slightly loosened vs exact divide because of
    # pl.reciprocal(approx=True) in the softmax normalization.
    assert jnp.allclose(out, ref, atol=2e-3, rtol=2e-3), "mismatch vs reference"

    print("KERNEL_OK")
</pallas_src>

<mosaic_0001>
module attributes {stable_mosaic.version = 11 : i64} {
  func.func @rztx_kernel(%arg0: memref<16x32xf32, #tpu.memory_space<vmem>>, %arg1: memref<32x96xf32, #tpu.memory_space<vmem>>, %arg2: memref<1x96xf32, #tpu.memory_space<vmem>>, %arg3: memref<32x32xf32, #tpu.memory_space<vmem>>, %arg4: memref<1x32xf32, #tpu.memory_space<vmem>>, %arg5: memref<32x64xf32, #tpu.memory_space<vmem>>, %arg6: memref<1x64xf32, #tpu.memory_space<vmem>>, %arg7: memref<64x32xf32, #tpu.memory_space<vmem>>, %arg8: memref<1x32xf32, #tpu.memory_space<vmem>>, %arg9: memref<1xf32, #tpu.memory_space<smem>>, %arg10: memref<16x32xf32, #tpu.memory_space<vmem>>) attributes {dimension_semantics = [], scalar_prefetch = 0 : i64, scratch_operands = 0 : i64, tpu.core_type = #tpu.core_type<tc>} {
    %c0 = arith.constant 0 : index
    %c0_0 = arith.constant 0 : index
    %0 = vector.load %arg0[%c0, %c0_0] : memref<16x32xf32, #tpu.memory_space<vmem>>, vector<16x32xf32>
    %c0_1 = arith.constant 0 : index
    %1 = memref.load %arg9[%c0_1] : memref<1xf32, #tpu.memory_space<smem>>
    %c0_2 = arith.constant 0 : index
    %c0_3 = arith.constant 0 : index
    %2 = vector.load %arg1[%c0_2, %c0_3] : memref<32x96xf32, #tpu.memory_space<vmem>>, vector<32x96xf32>
    %cst = arith.constant dense<0.000000e+00> : vector<16x96xf32>
    %3 = tpu.matmul %0, %2, %cst {dimension_numbers = #tpu.dot_dimension_numbers<[1], [0], [0], [1], [0, 0, 1, 1], [], []>} : vector<16x32xf32>, vector<32x96xf32>, vector<16x96xf32> -> vector<16x96xf32>
    %c0_4 = arith.constant 0 : index
    %c0_5 = arith.constant 0 : index
    %4 = vector.load %arg2[%c0_4, %c0_5] : memref<1x96xf32, #tpu.memory_space<vmem>>, vector<1x96xf32>
    %5 = vector.broadcast %4 : vector<1x96xf32> to vector<16x96xf32>
    %6 = arith.addf %3, %5 : vector<16x96xf32>
    %7 = vector.extract_strided_slice %6 {offsets = [0, 0], sizes = [16, 32], strides = [1, 1]} : vector<16x96xf32> to vector<16x32xf32>
    %cst_6 = arith.constant 0.353553385 : f32
    %8 = vector.broadcast %cst_6 : f32 to vector<16x32xf32>
    %9 = arith.mulf %7, %8 : vector<16x32xf32>
    %10 = vector.shape_cast %9 : vector<16x32xf32> to vector<2x8x32xf32>
    %11 = vector.extract_strided_slice %6 {offsets = [0, 32], sizes = [16, 32], strides = [1, 1]} : vector<16x96xf32> to vector<16x32xf32>
    %12 = vector.shape_cast %11 : vector<16x32xf32> to vector<2x8x32xf32>
    %13 = vector.extract_strided_slice %6 {offsets = [0, 64], sizes = [16, 32], strides = [1, 1]} : vector<16x96xf32> to vector<16x32xf32>
    %14 = vector.shape_cast %13 : vector<16x32xf32> to vector<2x8x32xf32>
    %15 = vector.extract_strided_slice %10 {offsets = [0, 0, 0], sizes = [2, 8, 8], strides = [1, 1, 1]} : vector<2x8x32xf32> to vector<2x8x8xf32>
    %16 = vector.extract_strided_slice %12 {offsets = [0, 0, 0], sizes = [2, 8, 8], strides = [1, 1, 1]} : vector<2x8x32xf32> to vector<2x8x8xf32>
    %17 = vector.extract_strided_slice %14 {offsets = [0, 0, 0], sizes = [2, 8, 8], strides = [1, 1, 1]} : vector<2x8x32xf32> to vector<2x8x8xf32>
    "tpu.trace_start"() <{level = 10 : i32, message = "bqd,bkd->bqk"}> : () -> ()
    %cst_7 = arith.constant dense<0.000000e+00> : vector<2x8x8xf32>
    %18 = tpu.matmul %15, %16, %cst_7 {dimension_numbers = #tpu.dot_dimension_numbers<[2], [2], [1], [1], [0, 0, 0, 1, 1, 1], [0], [0]>} : vector<2x8x8xf32>, vector<2x8x8xf32>, vector<2x8x8xf32> -> vector<2x8x8xf32>
    "tpu.trace_stop"() : () -> ()
    %cst_8 = arith.constant dense<0xFF800000> : vector<2x8xf32>
    %19 = vector.multi_reduction <maximumf>, %18, %cst_8 [2] : vector<2x8x8xf32> to vector<2x8xf32>
    %20 = vector.shape_cast %19 : vector<2x8xf32> to vector<2x8x1xf32>
    %21 = vector.broadcast %20 : vector<2x8x1xf32> to vector<2x8x8xf32>
    %22 = arith.subf %18, %21 : vector<2x8x8xf32>
    %23 = math.exp %22 : vector<2x8x8xf32>
    %cst_9 = arith.constant dense<0.000000e+00> : vector<2x8xf32>
    %24 = vector.multi_reduction <add>, %23, %cst_9 [2] : vector<2x8x8xf32> to vector<2x8xf32>
    %25 = vector.shape_cast %24 : vector<2x8xf32> to vector<2x8x1xf32>
    %26 = tpu.reciprocal %25 {approx = true} : vector<2x8x1xf32> -> vector<2x8x1xf32>
    %27 = vector.broadcast %26 : vector<2x8x1xf32> to vector<2x8x8xf32>
    %28 = arith.mulf %23, %27 : vector<2x8x8xf32>
    "tpu.trace_start"() <{level = 10 : i32, message = "bqk,bkd->bqd"}> : () -> ()
    %cst_10 = arith.constant dense<0.000000e+00> : vector<2x8x8xf32>
    %29 = tpu.matmul %28, %17, %cst_10 {dimension_numbers = #tpu.dot_dimension_numbers<[2], [1], [1], [2], [0, 0, 0, 1, 1, 2], [0], [0]>} : vector<2x8x8xf32>, vector<2x8x8xf32>, vector<2x8x8xf32> -> vector<2x8x8xf32>
    "tpu.trace_stop"() : () -> ()
    %30 = vector.extract_strided_slice %10 {offsets = [0, 0, 8], sizes = [2, 8, 8], strides = [1, 1, 1]} : vector<2x8x32xf32> to vector<2x8x8xf32>
    %31 = vector.extract_strided_slice %12 {offsets = [0, 0, 8], sizes = [2, 8, 8], strides = [1, 1, 1]} : vector<2x8x32xf32> to vector<2x8x8xf32>
    %32 = vector.extract_strided_slice %14 {offsets = [0, 0, 8], sizes = [2, 8, 8], strides = [1, 1, 1]} : vector<2x8x32xf32> to vector<2x8x8xf32>
    "tpu.trace_start"() <{level = 10 : i32, message = "bqd,bkd->bqk"}> : () -> ()
    %cst_11 = arith.constant dense<0.000000e+00> : vector<2x8x8xf32>
    %33 = tpu.matmul %30, %31, %cst_11 {dimension_numbers = #tpu.dot_dimension_numbers<[2], [2], [1], [1], [0, 0, 0, 1, 1, 1], [0], [0]>} : vector<2x8x8xf32>, vector<2x8x8xf32>, vector<2x8x8xf32> -> vector<2x8x8xf32>
    "tpu.trace_stop"() : () -> ()
    %cst_12 = arith.constant dense<0xFF800000> : vector<2x8xf32>
    %34 = vector.multi_reduction <maximumf>, %33, %cst_12 [2] : vector<2x8x8xf32> to vector<2x8xf32>
    %35 = vector.shape_cast %34 : vector<2x8xf32> to vector<2x8x1xf32>
    %36 = vector.broadcast %35 : vector<2x8x1xf32> to vector<2x8x8xf32>
    %37 = arith.subf %33, %36 : vector<2x8x8xf32>
    %38 = math.exp %37 : vector<2x8x8xf32>
    %cst_13 = arith.constant dense<0.000000e+00> : vector<2x8xf32>
    %39 = vector.multi_reduction <add>, %38, %cst_13 [2] : vector<2x8x8xf32> to vector<2x8xf32>
    %40 = vector.shape_cast %39 : vector<2x8xf32> to vector<2x8x1xf32>
    %41 = tpu.reciprocal %40 {approx = true} : vector<2x8x1xf32> -> vector<2x8x1xf32>
    %42 = vector.broadcast %41 : vector<2x8x1xf32> to vector<2x8x8xf32>
    %43 = arith.mulf %38, %42 : vector<2x8x8xf32>
    "tpu.trace_start"() <{level = 10 : i32, message = "bqk,bkd->bqd"}> : () -> ()
    %cst_14 = arith.constant dense<0.000000e+00> : vector<2x8x8xf32>
    %44 = tpu.matmul %43, %32, %cst_14 {dimension_numbers = #tpu.dot_dimension_numbers<[2], [1], [1], [2], [0, 0, 0, 1, 1, 2], [0], [0]>} : vector<2x8x8xf32>, vector<2x8x8xf32>, vector<2x8x8xf32> -> vector<2x8x8xf32>
    "tpu.trace_stop"() : () -> ()
    %45 = vector.extract_strided_slice %10 {offsets = [0, 0, 16], sizes = [2, 8, 8], strides = [1, 1, 1]} : vector<2x8x32xf32> to vector<2x8x8xf32>
    %46 = vector.extract_strided_slice %12 {offsets = [0, 0, 16], sizes = [2, 8, 8], strides = [1, 1, 1]} : vector<2x8x32xf32> to vector<2x8x8xf32>
    %47 = vector.extract_strided_slice %14 {offsets = [0, 0, 16], sizes = [2, 8, 8], strides = [1, 1, 1]} : vector<2x8x32xf32> to vector<2x8x8xf32>
    "tpu.trace_start"() <{level = 10 : i32, message = "bqd,bkd->bqk"}> : () -> ()
    %cst_15 = arith.constant dense<0.000000e+00> : vector<2x8x8xf32>
    %48 = tpu.matmul %45, %46, %cst_15 {dimension_numbers = #tpu.dot_dimension_numbers<[2], [2], [1], [1], [0, 0, 0, 1, 1, 1], [0], [0]>} : vector<2x8x8xf32>, vector<2x8x8xf32>, vector<2x8x8xf32> -> vector<2x8x8xf32>
    "tpu.trace_stop"() : () -> ()
    %cst_16 = arith.constant dense<0xFF800000> : vector<2x8xf32>
    %49 = vector.multi_reduction <maximumf>, %48, %cst_16 [2] : vector<2x8x8xf32> to vector<2x8xf32>
    %50 = vector.shape_cast %49 : vector<2x8xf32> to vector<2x8x1xf32>
    %51 = vector.broadcast %50 : vector<2x8x1xf32> to vector<2x8x8xf32>
    %52 = arith.subf %48, %51 : vector<2x8x8xf32>
    %53 = math.exp %52 : vector<2x8x8xf32>
    %cst_17 = arith.constant dense<0.000000e+00> : vector<2x8xf32>
    %54 = vector.multi_reduction <add>, %53, %cst_17 [2] : vector<2x8x8xf32> to vector<2x8xf32>
    %55 = vector.shape_cast %54 : vector<2x8xf32> to vector<2x8x1xf32>
    %56 = tpu.reciprocal %55 {approx = true} : vector<2x8x1xf32> -> vector<2x8x1xf32>
    %57 = vector.broadcast %56 : vector<2x8x1xf32> to vector<2x8x8xf32>
    %58 = arith.mulf %53, %57 : vector<2x8x8xf32>
    "tpu.trace_start"() <{level = 10 : i32, message = "bqk,bkd->bqd"}> : () -> ()
    %cst_18 = arith.constant dense<0.000000e+00> : vector<2x8x8xf32>
    %59 = tpu.matmul %58, %47, %cst_18 {dimension_numbers = #tpu.dot_dimension_numbers<[2], [1], [1], [2], [0, 0, 0, 1, 1, 2], [0], [0]>} : vector<2x8x8xf32>, vector<2x8x8xf32>, vector<2x8x8xf32> -> vector<2x8x8xf32>
    "tpu.trace_stop"() : () -> ()
    %60 = vector.extract_strided_slice %10 {offsets = [0, 0, 24], sizes = [2, 8, 8], strides = [1, 1, 1]} : vector<2x8x32xf32> to vector<2x8x8xf32>
    %61 = vector.extract_strided_slice %12 {offsets = [0, 0, 24], sizes = [2, 8, 8], strides = [1, 1, 1]} : vector<2x8x32xf32> to vector<2x8x8xf32>
    %62 = vector.extract_strided_slice %14 {offsets = [0, 0, 24], sizes = [2, 8, 8], strides = [1, 1, 1]} : vector<2x8x32xf32> to vector<2x8x8xf32>
    "tpu.trace_start"() <{level = 10 : i32, message = "bqd,bkd->bqk"}> : () -> ()
    %cst_19 = arith.constant dense<0.000000e+00> : vector<2x8x8xf32>
    %63 = tpu.matmul %60, %61, %cst_19 {dimension_numbers = #tpu.dot_dimension_numbers<[2], [2], [1], [1], [0, 0, 0, 1, 1, 1], [0], [0]>} : vector<2x8x8xf32>, vector<2x8x8xf32>, vector<2x8x8xf32> -> vector<2x8x8xf32>
    "tpu.trace_stop"() : () -> ()
    %cst_20 = arith.constant dense<0xFF800000> : vector<2x8xf32>
    %64 = vector.multi_reduction <maximumf>, %63, %cst_20 [2] : vector<2x8x8xf32> to vector<2x8xf32>
    %65 = vector.shape_cast %64 : vector<2x8xf32> to vector<2x8x1xf32>
    %66 = vector.broadcast %65 : vector<2x8x1xf32> to vector<2x8x8xf32>
    %67 = arith.subf %63, %66 : vector<2x8x8xf32>
    %68 = math.exp %67 : vector<2x8x8xf32>
    %cst_21 = arith.constant dense<0.000000e+00> : vector<2x8xf32>
    %69 = vector.multi_reduction <add>, %68, %cst_21 [2] : vector<2x8x8xf32> to vector<2x8xf32>
    %70 = vector.shape_cast %69 : vector<2x8xf32> to vector<2x8x1xf32>
    %71 = tpu.reciprocal %70 {approx = true} : vector<2x8x1xf32> -> vector<2x8x1xf32>
    %72 = vector.broadcast %71 : vector<2x8x1xf32> to vector<2x8x8xf32>
    %73 = arith.mulf %68, %72 : vector<2x8x8xf32>
    "tpu.trace_start"() <{level = 10 : i32, message = "bqk,bkd->bqd"}> : () -> ()
    %cst_22 = arith.constant dense<0.000000e+00> : vector<2x8x8xf32>
    %74 = tpu.matmul %73, %62, %cst_22 {dimension_numbers = #tpu.dot_dimension_numbers<[2], [1], [1], [2], [0, 0, 0, 1, 1, 2], [0], [0]>} : vector<2x8x8xf32>, vector<2x8x8xf32>, vector<2x8x8xf32> -> vector<2x8x8xf32>
    "tpu.trace_stop"() : () -> ()
    %75 = tpu.concatenate %29, %44, %59, %74 in 2 : vector<2x8x8xf32>, vector<2x8x8xf32>, vector<2x8x8xf32>, vector<2x8x8xf32> -> vector<2x8x32xf32>
    %76 = vector.shape_cast %75 : vector<2x8x32xf32> to vector<16x32xf32>
    %c0_23 = arith.constant 0 : index
    %c0_24 = arith.constant 0 : index
    %77 = vector.load %arg3[%c0_23, %c0_24] : memref<32x32xf32, #tpu.memory_space<vmem>>, vector<32x32xf32>
    %cst_25 = arith.constant dense<0.000000e+00> : vector<16x32xf32>
    %78 = tpu.matmul %76, %77, %cst_25 {dimension_numbers = #tpu.dot_dimension_numbers<[1], [0], [0], [1], [0, 0, 1, 1], [], []>} : vector<16x32xf32>, vector<32x32xf32>, vector<16x32xf32> -> vector<16x32xf32>
    %c0_26 = arith.constant 0 : index
    %c0_27 = arith.constant 0 : index
    %79 = vector.load %arg4[%c0_26, %c0_27] : memref<1x32xf32, #tpu.memory_space<vmem>>, vector<1x32xf32>
    %80 = vector.broadcast %79 : vector<1x32xf32> to vector<16x32xf32>
    %81 = arith.addf %78, %80 : vector<16x32xf32>
    %82 = vector.broadcast %1 : f32 to vector<16x32xf32>
    %83 = arith.mulf %82, %81 : vector<16x32xf32>
    %84 = arith.addf %0, %83 : vector<16x32xf32>
    %c0_28 = arith.constant 0 : index
    %c0_29 = arith.constant 0 : index
    %85 = vector.load %arg5[%c0_28, %c0_29] : memref<32x64xf32, #tpu.memory_space<vmem>>, vector<32x64xf32>
    %cst_30 = arith.constant dense<0.000000e+00> : vector<16x64xf32>
    %86 = tpu.matmul %84, %85, %cst_30 {dimension_numbers = #tpu.dot_dimension_numbers<[1], [0], [0], [1], [0, 0, 1, 1], [], []>} : vector<16x32xf32>, vector<32x64xf32>, vector<16x64xf32> -> vector<16x64xf32>
    %c0_31 = arith.constant 0 : index
    %c0_32 = arith.constant 0 : index
    %87 = vector.load %arg6[%c0_31, %c0_32] : memref<1x64xf32, #tpu.memory_space<vmem>>, vector<1x64xf32>
    %88 = vector.broadcast %87 : vector<1x64xf32> to vector<16x64xf32>
    %89 = arith.addf %86, %88 : vector<16x64xf32>
    %cst_33 = arith.constant 0.000000e+00 : f32
    %90 = vector.broadcast %cst_33 : f32 to vector<16x64xf32>
    %91 = arith.maximumf %89, %90 : vector<16x64xf32>
    %c0_34 = arith.constant 0 : index
    %c0_35 = arith.constant 0 : index
    %92 = vector.load %arg7[%c0_34, %c0_35] : memref<64x32xf32, #tpu.memory_space<vmem>>, vector<64x32xf32>
    %cst_36 = arith.constant dense<0.000000e+00> : vector<16x32xf32>
    %93 = tpu.matmul %91, %92, %cst_36 {dimension_numbers = #tpu.dot_dimension_numbers<[1], [0], [0], [1], [0, 0, 1, 1], [], []>} : vector<16x64xf32>, vector<64x32xf32>, vector<16x32xf32> -> vector<16x32xf32>
    %c0_37 = arith.constant 0 : index
    %c0_38 = arith.constant 0 : index
    %94 = vector.load %arg8[%c0_37, %c0_38] : memref<1x32xf32, #tpu.memory_space<vmem>>, vector<1x32xf32>
    %95 = vector.broadcast %94 : vector<1x32xf32> to vector<16x32xf32>
    %96 = arith.addf %93, %95 : vector<16x32xf32>
    %97 = vector.broadcast %1 : f32 to vector<16x32xf32>
    %98 = arith.mulf %97, %96 : vector<16x32xf32>
    %99 = arith.addf %84, %98 : vector<16x32xf32>
    %c0_39 = arith.constant 0 : index
    %c0_40 = arith.constant 0 : index
    %100 = vector.load %arg10[%c0_39, %c0_40] : memref<16x32xf32, #tpu.memory_space<vmem>>, vector<16x32xf32>
    tpu.vector_store %arg10[%c0_39, %c0_40], %99 {strides = array<i32>} : memref<16x32xf32, #tpu.memory_space<vmem>>, vector<16x32xf32>,
    return
  }
}

</mosaic_0001>

<bundles_post_ra>
// kernel: tpu_custom_call.1
= control target key start
LH: loop header
LB: loop body
LE: loop exit
PB: predicated region body
PF: predicated region fallthrough
CT: control target
= control target key end

     0   :  { %16 = vsyncpa [#allocation4], 0  ;;  %s1199_s0 = inlined_call_operand.hbm [shape: f32[16,32], index: 0, kind: input, shape index: {}]   ;;  %s1200_s1 = inlined_call_operand.vmem [shape: f32[32,96], index: 1, kind: input, shape index: {}]   ;;  %s1201_s2 = inlined_call_operand.vmem [shape: f32[1,96], index: 2, kind: input, shape index: {}]   ;;  %s1202_s3 = inlined_call_operand.vmem [shape: f32[32,32], index: 3, kind: input, shape index: {}]   ;;  %s1203_s4 = inlined_call_operand.vmem [shape: f32[1,32], index: 4, kind: input, shape index: {}]   ;;  %s1204_s5 = inlined_call_operand.vmem [shape: f32[32,64], index: 5, kind: input, shape index: {}]   ;;  %s1205_s6 = inlined_call_operand.vmem [shape: f32[1,64], index: 6, kind: input, shape index: {}]   ;;  %s1206_s7 = inlined_call_operand.vmem [shape: f32[64,32], index: 7, kind: input, shape index: {}]   ;;  %s1207_s8 = inlined_call_operand.vmem [shape: f32[1,32], index: 8, kind: input, shape index: {}]   ;;  %s1208_s9 = inlined_call_operand.<no memory space> [shape: f32[1], index: 9, kind: input, shape index: {}]   ;;  %s1209_s10 = inlined_call_operand.hbm [shape: f32[16,32], index: 10, kind: output, shape index: {}]  }
   0x1   :  { %17 = vsyncpa [#allocation5], 0  ;;  %s22_s15 = sshll.u32 %s1199_s0, 4  ;;  %s939_s16 = smov [#allocation3]   ;;  %s23_s15 = int_to_ptr.hbm [resolvable:$true] %s22_s15 }
   0x2   :  { %s24_s17 = sshll.u32 %s939_s16, 4  ;;  %s940_s18 = smov 128   ;;  %s25_s17 = int_to_ptr.vmem [resolvable:$true] %s24_s17 }
   0x3   :  { %s941_s19 = smov 8  }
   0x4   :  { %30 = dma.hbm_to_vmem [thread:$0]  %s23_s15, 256, %s25_s17, [#allocation4], %s940_s18, %s940_s18, %s941_s19  }
   0x5   :  { %935 = dma.done.wait [#allocation4], 256  }
   0x6   :  { %936 = vsyncadd [#allocation4], 4294967040  ;;  %v59_v0 = vld [vmem:[%s1200_s1 + $0x18] sm:$0xff]  ;;  %v58_v1 = vld [vmem:[%s1200_s1 + $0x10] sm:$0xff]  ;;  %vm64_vm0 = vcmask 261120   ;;  %s943_s29 = smov 96  }
   0x7   :  { %83 = vmatpush.msra.mxu0 %v59_v0  ;;  %v57_v2 = vld [vmem:[%s1200_s1 + $0x8] sm:$0xff]  ;;  %v56_v3 = vld [vmem:[%s1200_s1] sm:$0xff]  ;;  %s942_s1 = smov 64   ;;  %s944_s30 = smov 88   ;;  %vm99_vm1 = vcmask 64512   ;;  %vm643_vm2 = vcmask 130048  }
   0x8   :  { %v1029_v4 = vld [vmem:[#allocation3] sm:$0xff]  ;;  %v1033_v5 = vld [vmem:[#allocation3 + $0x8] sm:$0xff]  ;;  %s946_s11 = smov 72   ;;  %s947_s12 = smov 80   ;;  %vm646_vm3 = vcmask 195584   ;;  %vm742_vm4 = vcmask 523264  }
   0x9   :  { %84 = vmatpush.msra.mxu0 %v58_v1  ;;  %v851_v6 = vld [vmem:[%s1201_s2] ss:$0 sm:$0xff]  ;;  %s945_s2 = smov 120   ;;  %s948_s13 = smov 112  }
   0xa   :  { %s949_s14 = smov 104   ;;  %s950_s15 = smov 56  }
   0xb   :  { %85 = vmatpush.msra.mxu0 %v57_v2  ;;  %s951_s16 = smov 40   ;;  %s952_s17 = smov 48  }
   0xc   :  { %s953_s20 = smov 16   ;;  %s954_s21 = smov 24  }
   0xd   :  { %86 = vmatpush.msra.mxu0 %v56_v3 }
   0xe   :  { %797 = vmatmul.msk.f32.vlgmr.msra.gmra.mxu0 %vm64_vm0, %v1029_v4 }
  0x16   :  { %798 = vmatmul.msk.f32.gmra.mxu0 %vm64_vm0, %v1033_v5 }
  0x8b   :  { %v88_v7 = vpop.f32.mrf.mxu0 }
  0x8c   :  { %v1040_v8 = vadd.f32 %v851_v6, %v88_v7 }
  0x8e   :  { %175 = vrot.lane.b32.xlu2 %v1040_v8, %s942_s1  ;;  %97 = vrot.lane.b32.xlu0 %v1040_v8, %s943_s29  ;;  %v94_v12 = vmul.f32 0.35355338, %v1040_v8 }
  0x93   :  { %v91_v9 = vpop.f32.mrf.mxu0 }
  0x94   :  { %v1045_v10 = vadd.f32 %v851_v6, %v91_v9 }
  0x96   :  { %126 = vrot.lane.b32.xlu1 %v1045_v10, %s943_s29  ;;  %257 = vrot.lane.b32.xlu2 %v1045_v10, %s944_s30  ;;  %v95_v11 = vmul.f32 0.35355338, %v1045_v10  ;;  %v846_v3 = vpack.i.bf16 %v1045_v10, %v1040_v8 }
  0x9e   :  { %255 = vrot.lane.b32.xlu2 %v95_v11, %s945_s2  ;;  %227 = vrot.lane.b32.xlu1 %v94_v12, %s945_s2 }
  0xa6   :  { %229 = vrot.lane.b32.xlu2 %v1040_v8, %s944_s30  ;;  %489 = vrot.lane.b32.xlu1 %v1040_v8, %s946_s11 }
  0xae   :  { %359 = vrot.lane.b32.xlu2 %v1040_v8, %s947_s12 }
  0xb6   :  { %357 = vrot.lane.b32.xlu2 %v94_v12, %s948_s13 }
  0xbe   :  { %487 = vrot.lane.b32.xlu2 %v94_v12, %s949_s14 }
  0xc6   :  { %517 = vrot.lane.b32.xlu2 %v1045_v10, %s946_s11 }
  0xe8   :  { %v176_v13 = vpop.permute.xlu2 %175 }
  0xf0   :  { %v258_v14 = vpop.permute.xlu2 %257 }
  0xf8   :  { %v256_v15 = vpop.permute.xlu2 %255 }
 0x100   :  { %v98_v16 = vpop.permute.xlu0 %97  ;;  %v230_v17 = vpop.permute.xlu2 %229 }
 0x101   :  { %799 = vmatpush.xpose.msk.msra.mxu1 %vm99_vm1, %v98_v16 }
 0x104   :  { %800 = vmatmul.msk.f32.vlgmr.msra.gmra.mxu1 %vm99_vm1, %v94_v12 }
 0x105   :  { %196 = vmatpush.msrb.mxu1 %v176_v13 }
 0x107   :  { %805 = vmatpush.xpose.msk.msra.mxu1 %vm99_vm1, %v230_v17 }
 0x108   :  { %v127_v18 = vpop.permute.xlu1 %126  ;;  %v360_v19 = vpop.permute.xlu2 %359 }
 0x109   :  { %801 = vmatpush.xpose.msk.msra.mxu2 %vm99_vm1, %v127_v18 }
 0x10c   :  { %802 = vmatmul.msk.f32.vlgmr.msra.gmra.mxu2 %vm99_vm1, %v95_v11 }
 0x10d   :  { %807 = vmatpush.xpose.msk.msrb.mxu2 %vm99_vm1, %v258_v14 }
 0x110   :  { %v228_v20 = vpop.permute.xlu1 %227  ;;  %v358_v22 = vpop.permute.xlu2 %357 }
 0x111   :  { %811 = vmatpush.xpose.msk.msra.mxu2 %vm99_vm1, %v360_v19 }
 0x114   :  { %808 = vmatmul.msk.f32.vlgmr.msrb.gmra.mxu2 %vm99_vm1, %v256_v15 }
 0x118   :  { %v490_v21 = vpop.permute.xlu1 %489  ;;  %v488_v23 = vpop.permute.xlu2 %487 }
 0x119   :  { %817 = vmatpush.xpose.msk.msrb.mxu2 %vm99_vm1, %v490_v21 }
 0x11c   :  { %812 = vmatmul.msk.f32.vlgmr.msra.gmra.mxu2 %vm99_vm1, %v358_v22 }
 0x120   :  { %v518_v41 = vpop.permute.xlu2 %517 }
 0x124   :  { %818 = vmatmul.msk.f32.vlgmr.msrb.gmra.mxu2 %vm99_vm1, %v488_v23 }
 0x181   :  { %v122_v24 = vpop.f32.mrf.mxu1 }
 0x182   :  { %v153_v25 = vsel %vm99_vm1, %v122_v24, -inf }
 0x183   :  { %154 = vmax.xlane.f32.xlu0 %v153_v25 }
 0x18f   :  { %v150_v26 = vpop.f32.mrf.mxu2 }
 0x190   :  { %v156_v27 = vsel %vm99_vm1, %v150_v26, -inf }
 0x191   :  { %157 = vmax.xlane.f32.xlu2 %v156_v27 }
 0x197   :  { %385 = vrot.lane.b32.xlu0 %v95_v11, %s948_s13  ;;  %v280_v28 = vpop.f32.mrf.mxu2 }
 0x198   :  { %v286_v36 = vsel %vm99_vm1, %v280_v28, -inf }
 0x199   :  { %287 = vmax.xlane.f32.xlu2 %v286_v36 }
 0x19f   :  { %v382_v29 = vpop.f32.mrf.mxu2 }
 0x1a0   :  { %v413_v30 = vsel %vm99_vm1, %v382_v29, -inf }
 0x1a7   :  { %v512_v51 = vpop.f32.mrf.mxu2 }
 0x1a8   :  { %v543_v53 = vsel %vm99_vm1, %v512_v51, -inf }
 0x1c1   :  { %414 = vmax.xlane.f32.xlu0 %v413_v30 }
 0x1f6   :  { %v155_v31 = vpop.xlane.xlu0 %154 }
 0x1f7   :  { %v159_v32 = vsub.f32 %v122_v24, %v155_v31 }
 0x1f9   :  { %v161_v33 = vmul.f32 1.442695, %v159_v32 }
 0x1fb   :  { %855 = vpow2.f32 %v161_v33 }
 0x201   :  { %v856_v34 = vpop.eup %855 }
 0x202   :  { %v165_v35 = vsel %vm99_vm1, %v856_v34, 0.0 }
 0x203   :  { %166 = vadd.xlane.f32.xlu1 %v165_v35 }
 0x204   :  { %v158_v45 = vpop.xlane.xlu2 %157 }
 0x205   :  { %v160_v46 = vsub.f32 %v150_v26, %v158_v45 }
 0x207   :  { %v163_v49 = vmul.f32 1.442695, %v160_v46 }
 0x209   :  { %v386_v42 = vpop.permute.xlu0 %385 }
 0x20c   :  { %v288_v57 = vpop.xlane.xlu2 %287 }
 0x20d   :  { %v290_v59 = vsub.f32 %v280_v28, %v288_v57 }
 0x20f   :  { %v293_v63 = vmul.f32 1.442695, %v290_v59 }
 0x21c   :  { %387 = vrot.lane.b32.xlu1 %v1045_v10, %s947_s12 }
 0x224   :  { %515 = vrot.lane.b32.xlu1 %v95_v11, %s949_s14 }
 0x234   :  { %v415_v50 = vpop.xlane.xlu0 %414 }
 0x235   :  { %v419_v52 = vsub.f32 %v382_v29, %v415_v50 }
 0x237   :  { %v421_v56 = vmul.f32 1.442695, %v419_v52 }
 0x276   :  { %v167_v37 = vpop.xlane.xlu1 %166 }
 0x277   :  { %857 = vrcp.f32 %v167_v37 }
 0x278   :  { %859 = vpow2.f32 %v163_v49 }
 0x279   :  { %861 = vpow2.f32 %v421_v56 }
 0x27a   :  { %863 = vpow2.f32 %v293_v63 }
 0x27d   :  { %v858_v38 = vpop.eup %857 }
 0x27e   :  { %v173_v39 = vmul.f32 %v858_v38, %v856_v34  ;;  %v860_v58 = vpop.eup %859 }
 0x27f   :  { %v168_v60 = vsel %vm99_vm1, %v860_v58, 0.0  ;;  %v1091_v0 = vpop.eup %861 }
 0x280   :  { %803 = vmatmul.msk.f32.vlgmr.msrb.gmra.mxu1 %vm99_vm1, %v173_v39  ;;  %v425_v1 = vsel %vm99_vm1, %v1091_v0, 0.0  ;;  %v864_v2 = vpop.eup %863 }
 0x281   :  { %v298_v6 = vsel %vm99_vm1, %v864_v2, 0.0 }
 0x288   :  { %806 = vmatmul.msk.f32.vlgmr.msra.gmra.mxu1 %vm99_vm1, %v228_v20 }
 0x28e   :  { %v388_v40 = vpop.permute.xlu1 %387 }
 0x28f   :  { %813 = vmatpush.xpose.msk.msrb.mxu0 %vm99_vm1, %v388_v40 }
 0x292   :  { %814 = vmatmul.msk.f32.vlgmr.msrb.gmra.mxu0 %vm99_vm1, %v386_v42 }
 0x293   :  { %819 = vmatpush.xpose.msk.msra.mxu0 %vm99_vm1, %v518_v41 }
 0x296   :  { %v516_v43 = vpop.permute.xlu1 %515 }
 0x29a   :  { %820 = vmatmul.msk.f32.vlgmr.msra.gmra.mxu0 %vm99_vm1, %v516_v43 }
 0x2fd   :  { %v1084_v44 = vpop.f32.mrf.mxu1 }
 0x305   :  { %v252_v47 = vpop.f32.mrf.mxu1 }
 0x306   :  { %v283_v48 = vsel %vm99_vm1, %v252_v47, -inf }
 0x307   :  { %284 = vmax.xlane.f32.xlu1 %v283_v48 }
 0x30f   :  { %544 = vmax.xlane.f32.xlu1 %v543_v53  ;;  %v410_v54 = vpop.f32.mrf.mxu0 }
 0x310   :  { %v416_v55 = vsel %vm99_vm1, %v410_v54, -inf }
 0x311   :  { %417 = vmax.xlane.f32.xlu0 %v416_v55 }
 0x317   :  { %169 = vadd.xlane.f32.xlu1 %v168_v60  ;;  %v540_v61 = vpop.f32.mrf.mxu0 }
 0x318   :  { %v546_v62 = vsel %vm99_vm1, %v540_v61, -inf }
 0x319   :  { %547 = vmax.xlane.f32.xlu2 %v546_v62 }
 0x31f   :  { %426 = vadd.xlane.f32.xlu1 %v425_v1  ;;  %v651_v1 = vld [vmem:[%s1202_s3 + $0x10] sm:$0xff] }
 0x325   :  { %847 = vrot.lane.b32.xlu0 %v846_v3, %s950_s15  ;;  %v649_v3 = vld [vmem:[%s1202_s3] sm:$0xff]  ;;  %s784_s15 = sshll.u32 %s1209_s10, 4  ;;  %s785_s15 = int_to_ptr.hbm [resolvable:$true] %s784_s15 }
 0x327   :  { %299 = vadd.xlane.f32.xlu1 %v298_v6 }
 0x32d   :  { %565 = vrot.lane.b32.xlu0 %v1040_v8, %s951_s16 }
 0x331   :  { %201 = vrot.lane.b32.xlu2 %v1045_v10, %s942_s1 }
 0x339   :  { %435 = vrot.lane.b32.xlu2 %v1040_v8, %s952_s17 }
 0x37a   :  { %v285_v7 = vpop.xlane.xlu1 %284 }
 0x37b   :  { %v289_v9 = vsub.f32 %v252_v47, %v285_v7 }
 0x37d   :  { %v291_v11 = vmul.f32 1.442695, %v289_v9 }
 0x37f   :  { %865 = vpow2.f32 %v291_v11 }
 0x382   :  { %v545_v12 = vpop.xlane.xlu1 %544 }
 0x383   :  { %v549_v13 = vsub.f32 %v512_v51, %v545_v12 }
 0x384   :  { %v418_v14 = vpop.xlane.xlu0 %417 }
 0x385   :  { %v866_v15 = vpop.eup %865  ;;  %v551_v16 = vmul.f32 1.442695, %v549_v13  ;;  %v420_v17 = vsub.f32 %v410_v54, %v418_v14 }
 0x386   :  { %v295_v18 = vsel %vm99_vm1, %v866_v15, 0.0 }
 0x387   :  { %867 = vpow2.f32 %v551_v16  ;;  %296 = vadd.xlane.f32.xlu0 %v295_v18  ;;  %v423_v19 = vmul.f32 1.442695, %v420_v17 }
 0x38a   :  { %v170_v20 = vpop.xlane.xlu1 %169 }
 0x38b   :  { %869 = vrcp.f32 %v170_v20  ;;  %v694_v20 = vld [vmem:[%s1204_s5 + $0x18] sm:$0xff] }
 0x38c   :  { %v548_v21 = vpop.xlane.xlu2 %547  ;;  %871 = vpow2.f32 %v423_v19  ;;  %717 = vmatpush.msrb.mxu0 %v694_v20 }
 0x38d   :  { %v868_v22 = vpop.eup %867  ;;  %v550_v8 = vsub.f32 %v540_v61, %v548_v21  ;;  %v692_v21 = vld [vmem:[%s1204_s5 + $0x8] sm:$0xff] }
 0x38e   :  { %v555_v23 = vsel %vm99_vm1, %v868_v22, 0.0 }
 0x38f   :  { %v553_v24 = vmul.f32 1.442695, %v550_v8  ;;  %556 = vadd.xlane.f32.xlu1 %v555_v23  ;;  %v737_v8 = vld [vmem:[%s1206_s7 + $0x38] sm:$0xff]  ;;  %v736_v23 = vld [vmem:[%s1206_s7 + $0x30] sm:$0xff] }
 0x391   :  { %v870_v25 = vpop.eup %869  ;;  %873 = vpow2.f32 %v553_v24  ;;  %v735_v24 = vld [vmem:[%s1206_s7 + $0x28] sm:$0xff] }
 0x392   :  { %v427_v26 = vpop.xlane.xlu1 %426  ;;  %v872_v27 = vpop.eup %871  ;;  %v174_v29 = vmul.f32 %v870_v25, %v860_v58  ;;  %v852_v25 = vld [vmem:[%s1203_s4] ss:$0 sm:$0xff] }
 0x393   :  { %v428_v30 = vsel %vm99_vm1, %v872_v27, 0.0 }
 0x394   :  { %v202_v28 = vpop.permute.xlu2 %201 }
 0x395   :  { %222 = vmatpush.msra.mxu3 %v202_v28 }
 0x396   :  { %804 = vmatmul.msk.f32.vlgmr.msra.gmra.mxu3 %vm99_vm1, %v174_v29  ;;  %v686_v29 = vstv %s1208_s9 }
 0x397   :  { %v874_v31 = vpop.eup %873  ;;  %429 = vadd.xlane.f32.xlu1 %v428_v30  ;;  %v848_v32 = vpop.permute.xlu0 %847 }
 0x398   :  { %v850_v33 = vunpack.i.h.bf16 %v848_v32  ;;  %v558_v34 = vsel %vm99_vm1, %v874_v31, 0.0  ;;  %v849_v35 = vunpack.i.l.bf16 %v848_v32 }
 0x399   :  { %559 = vadd.xlane.f32.xlu2 %v558_v34 }
 0x39a   :  { %v300_v36 = vpop.xlane.xlu1 %299  ;;  %326 = vmatpush.msrb.mxu3 %v849_v35  ;;  %352 = vmatpush.msrb.mxu1 %v850_v33 }
 0x39b   :  { %875 = vrcp.f32 %v300_v36  ;;  %591 = vrot.lane.b32.xlu0 %v1045_v10, %s951_s16 }
 0x39c   :  { %v436_v37 = vpop.permute.xlu2 %435 }
 0x39d   :  { %456 = vmatpush.msra.mxu3 %v436_v37  ;;  %v732_v37 = vld [vmem:[%s1206_s7 + $0x10] sm:$0xff] }
 0x39f   :  { %v566_v40 = vpop.permute.xlu0 %565 }
 0x3a1   :  { %v876_v38 = vpop.eup %875 }
 0x3a2   :  { %v304_v39 = vmul.f32 %v876_v38, %v864_v2  ;;  %v650_v2 = vld [vmem:[%s1202_s3 + $0x8] sm:$0xff] }
 0x3a3   :  { %v731_v38 = vld [vmem:[%s1206_s7 + $0x8] sm:$0xff] }
 0x3a4   :  { %810 = vmatmul.msk.f32.vlgmr.msrb.gmra.mxu1 %vm99_vm1, %v304_v39 }
 0x3b0   :  { %461 = vrot.lane.b32.xlu1 %v1045_v10, %s952_s17 }
 0x3fa   :  { %v297_v41 = vpop.xlane.xlu0 %296 }
 0x3fb   :  { %877 = vrcp.f32 %v297_v41 }
 0x3fc   :  { %879 = vrcp.f32 %v427_v26  ;;  %v734_v26 = vld [vmem:[%s1206_s7 + $0x20] sm:$0xff] }
 0x401   :  { %v878_v42 = vpop.eup %877 }
 0x402   :  { %v303_v43 = vmul.f32 %v878_v42, %v866_v15  ;;  %v557_v45 = vpop.xlane.xlu1 %556  ;;  %v880_v46 = vpop.eup %879 }
 0x403   :  { %881 = vrcp.f32 %v557_v45  ;;  %v433_v47 = vmul.f32 %v880_v46, %v1091_v0  ;;  %v652_v0 = vld [vmem:[%s1202_s3 + $0x18] sm:$0xff]  ;;  %v854_v46 = vld [vmem:[%s1207_s8] ss:$0 sm:$0xff] }
 0x404   :  { %809 = vmatmul.msk.f32.vlgmr.msrb.gmra.mxu3 %vm99_vm1, %v303_v43  ;;  %675 = vmatpush.msra.mxu2 %v652_v0 }
 0x405   :  { %586 = vmatpush.msrb.mxu3 %v566_v40 }
 0x406   :  { %676 = vmatpush.msra.mxu2 %v651_v1 }
 0x408   :  { %677 = vmatpush.msra.mxu2 %v650_v2 }
 0x409   :  { %v882_v48 = vpop.eup %881 }
 0x40a   :  { %v563_v49 = vmul.f32 %v882_v48, %v868_v22  ;;  %v430_v10 = vpop.xlane.xlu1 %429  ;;  %678 = vmatpush.msra.mxu2 %v649_v3  ;;  %v691_v22 = vld [vmem:[%s1204_s5] sm:$0xff] }
 0x40b   :  { %883 = vrcp.f32 %v430_v10 }
 0x40c   :  { %815 = vmatmul.msk.f32.vlgmr.msra.gmra.mxu3 %vm99_vm1, %v433_v47  ;;  %v560_v50 = vpop.xlane.xlu2 %559 }
 0x40d   :  { %885 = vrcp.f32 %v560_v50  ;;  %v592_v55 = vpop.permute.xlu0 %591  ;;  %757 = vmatpush.msra.mxu3 %v737_v8 }
 0x40f   :  { %758 = vmatpush.msra.mxu3 %v736_v23 }
 0x411   :  { %v884_v51 = vpop.eup %883  ;;  %759 = vmatpush.msra.mxu3 %v735_v24 }
 0x412   :  { %v434_v53 = vmul.f32 %v884_v51, %v872_v27  ;;  %v733_v27 = vld [vmem:[%s1206_s7 + $0x18] sm:$0xff] }
 0x413   :  { %v886_v56 = vpop.eup %885  ;;  %760 = vmatpush.msra.mxu3 %v734_v26 }
 0x414   :  { %821 = vmatmul.msk.f32.vlgmr.msrb.gmra.mxu3 %vm99_vm1, %v563_v49  ;;  %v564_v57 = vmul.f32 %v886_v56, %v874_v31 }
 0x415   :  { %761 = vmatpush.msra.mxu3 %v733_v27 }
 0x417   :  { %762 = vmatpush.msra.mxu3 %v732_v37 }
 0x419   :  { %v224_v58 = vpop.f32.mrf.mxu3  ;;  %763 = vmatpush.msra.mxu3 %v731_v38 }
 0x421   :  { %v354_v52 = vpop.f32.mrf.mxu1 }
 0x422   :  { %v462_v54 = vpop.permute.xlu1 %461  ;;  %621 = vrot.lane.b32.xlu1 %v354_v52, %s941_s19 }
 0x423   :  { %482 = vmatpush.msra.mxu1 %v462_v54 }
 0x424   :  { %816 = vmatmul.msk.f32.vlgmr.msra.gmra.mxu1 %vm99_vm1, %v434_v53 }
 0x425   :  { %612 = vmatpush.msrb.mxu1 %v592_v55 }
 0x42c   :  { %822 = vmatmul.msk.f32.vlgmr.msrb.gmra.mxu1 %vm99_vm1, %v564_v57 }
 0x487   :  { %v328_v59 = vpop.f32.mrf.mxu3 }
 0x488   :  { %619 = vrot.lane.b32.xlu0 %v328_v59, %s941_s19 }
 0x48f   :  { %v458_v60 = vpop.f32.mrf.mxu3 }
 0x490   :  { %627 = vrot.lane.b32.xlu0 %v458_v60, %s953_s20 }
 0x494   :  { %v622_v14 = vpop.permute.xlu1 %621 }
 0x495   :  { %v642_v16 = vsel %vm99_vm1, %v224_v58, %v622_v14 }
 0x497   :  { %v588_v61 = vpop.f32.mrf.mxu3 }
 0x498   :  { %635 = vrot.lane.b32.xlu0 %v588_v61, %s954_s21 }
 0x4a1   :  { %v484_v62 = vpop.f32.mrf.mxu1 }
 0x4a2   :  { %629 = vrot.lane.b32.xlu0 %v484_v62, %s953_s20 }
 0x4a9   :  { %v614_v63 = vpop.f32.mrf.mxu1 }
 0x4aa   :  { %637 = vrot.lane.b32.xlu1 %v614_v63, %s954_s21 }
 0x4fa   :  { %v620_v6 = vpop.permute.xlu0 %619 }
 0x4fb   :  { %v641_v9 = vsel %vm99_vm1, %v1084_v44, %v620_v6  ;;  %v693_v44 = vld [vmem:[%s1204_s5 + $0x10] sm:$0xff] }
 0x4fc   :  { %718 = vmatpush.msrb.mxu0 %v693_v44 }
 0x4fe   :  { %719 = vmatpush.msrb.mxu0 %v692_v21 }
 0x500   :  { %720 = vmatpush.msrb.mxu0 %v691_v22 }
 0x502   :  { %v628_v7 = vpop.permute.xlu0 %627 }
 0x503   :  { %v644_v11 = vsel %vm643_vm2, %v641_v9, %v628_v7 }
 0x50a   :  { %v636_v12 = vpop.permute.xlu0 %635 }
 0x50b   :  { %v647_v13 = vsel %vm646_vm3, %v644_v11, %v636_v12 }
 0x50c   :  { %823 = vmatmul.msk.f32.vlgmr.msra.gmra.mxu2 %vm64_vm0, %v647_v13 }
 0x514   :  { %v630_v15 = vpop.permute.xlu0 %629 }
 0x515   :  { %v645_v17 = vsel %vm643_vm2, %v642_v16, %v630_v15 }
 0x51c   :  { %v638_v18 = vpop.permute.xlu1 %637 }
 0x51d   :  { %v648_v19 = vsel %vm646_vm3, %v645_v17, %v638_v18 }
 0x51e   :  { %824 = vmatmul.msk.f32.gmra.mxu2 %vm64_vm0, %v648_v19 }
 0x58f   :  { %v680_v28 = vpop.f32.mrf.mxu2 }
 0x590   :  { %v681_v30 = vadd.f32 %v852_v25, %v680_v28 }
 0x592   :  { %v687_v31 = vmul.f32 %v686_v29, %v681_v30 }
 0x594   :  { %v689_v32 = vadd.f32 %v687_v31, %v1029_v4  ;;  %v730_v4 = vld [vmem:[%s1206_s7] sm:$0xff] }
 0x595   :  { %764 = vmatpush.msra.mxu3 %v730_v4 }
 0x596   :  { %825 = vmatmul.msk.f32.vlgmr.msrb.gmra.mxu0 %vm64_vm0, %v689_v32 }
 0x5a1   :  { %v683_v33 = vpop.f32.mrf.mxu2 }
 0x5a2   :  { %v684_v34 = vadd.f32 %v852_v25, %v683_v33 }
 0x5a4   :  { %v688_v35 = vmul.f32 %v686_v29, %v684_v34 }
 0x5a6   :  { %v690_v36 = vadd.f32 %v688_v35, %v1033_v5  ;;  %v853_v5 = vld [vmem:[%s1205_s6] ss:$0 sm:$0xff]  ;;  %s955_s6 = smov [#allocation6]  }
 0x5a7   :  { %s782_s7 = sshll.u32 %s955_s6, 4  ;;  %s783_s7 = int_to_ptr.vmem [resolvable:$true] %s782_s7 }
 0x5a8   :  { %826 = vmatmul.msk.f32.gmra.mxu0 %vm64_vm0, %v690_v36 }
 0x613   :  { %v722_v39 = vpop.f32.mrf.mxu0 }
 0x614   :  { %v723_v40 = vadd.f32 %v853_v5, %v722_v39 }
 0x616   :  { %v728_v41 = vmax.f32 %v723_v40, 0.0 }
 0x618   :  { %827 = vmatmul.msk.f32.vlgmr.msra.gmra.mxu3 %vm742_vm4, %v728_v41 }
 0x625   :  { %v725_v42 = vpop.f32.mrf.mxu0 }
 0x626   :  { %v726_v43 = vadd.f32 %v853_v5, %v725_v42 }
 0x628   :  { %v729_v45 = vmax.f32 %v726_v43, 0.0 }
 0x62a   :  { %828 = vmatmul.msk.f32.gmra.mxu3 %vm742_vm4, %v729_v45 }
 0x69b   :  { %v766_v47 = vpop.f32.mrf.mxu3 }
 0x69c   :  { %v767_v48 = vadd.f32 %v854_v46, %v766_v47 }
 0x69e   :  { %v772_v49 = vmul.f32 %v767_v48, %v686_v29 }
 0x6a0   :  { %v774_v10 = vadd.f32 %v772_v49, %v689_v32 }
 0x6a2   :  { %776 = vst.msk [vmem:[#allocation6] sm:$0xff] %vm64_vm0, %v774_v10 }
 0x6ad   :  { %v769_v50 = vpop.f32.mrf.mxu3 }
 0x6ae   :  { %v770_v51 = vadd.f32 %v854_v46, %v769_v50 }
 0x6b0   :  { %v773_v52 = vmul.f32 %v770_v51, %v686_v29 }
 0x6b2   :  { %v775_v53 = vadd.f32 %v773_v52, %v690_v36 }
 0x6b4   :  { %777 = vst.msk [vmem:[#allocation6 + $0x8] sm:$0xff] %vm64_vm0, %v775_v53 }
 0x6b5   :  { %790 = dma.vmem_to_hbm [thread:$0]  %s783_s7, 256, %s785_s15, [#allocation5], %s940_s18, %s940_s18, %s941_s19  }
 0x6b6   :  { %937 = dma.done.wait [#allocation5], 256  }
 0x6b7   :  { %938 = vsyncadd [#allocation5], 4294967040 }
 0x6b8   :  { %795 = vsyncpa [#allocation4], 1 }
 0x6b9   :  { %796 = vsyncpa [#allocation5], 1 }

</bundles_post_ra>
